<compile_context>
chip_gen: v6e
topology: v6e:2x2x1
jax: 0.10.0
libtpu: 0.0.40
codegen_flags: <defaults>
</compile_context>

<pallas_src>
import jax
import jax.numpy as jnp
import numpy as np
from jax.experimental import pallas as pl
from jax.experimental.pallas import tpu as pltpu


def _round_up(x, m):
    return ((x + m - 1) // m) * m


def _hier_embed_kernel(ids_ref, w_ref, table_ref, out_ref):
    """One BT tile: per-level weighted one-hot slabs -> single MXU dot.

    ids_ref:   (TILE_BT, L)  int32  raw remapped ids per level, in [0, V)
    w_ref:     (TILE_BT, L)  f32    per-level weight (token value at its last
                                    nonzero level, 1.0 elsewhere)
    table_ref: (L*Vp, Dp)           fused, pre-normalized, pre-scaled table;
                                    level l occupies rows [l*Vp, (l+1)*Vp)
    out_ref:   (TILE_BT, Dp) f32
    """
    ids = ids_ref[...]
    w = w_ref[...]
    tile_bt, num_levels = ids.shape
    vp = table_ref.shape[0] // num_levels          # 128-aligned per-level width

    # One iota reused by every level (hoisted broadcast).
    col = jax.lax.broadcasted_iota(jnp.int32, (tile_bt, vp), 1)

    # Per-level slab: compare only against this level's Vp columns (not L*Vp).
    # First slab is used directly — no zeros init, no add chain.
    slabs = []
    for l in range(num_levels):                    # static, tiny (L ~ 3-8)
        slabs.append(jnp.where(ids[:, l:l + 1] == col, w[:, l:l + 1], 0.0))
    onehot = jnp.concatenate(slabs, axis=-1)       # (tile, L*Vp), slabs 128-aligned

    out_ref[...] = jnp.dot(onehot.astype(table_ref.dtype), table_ref[...],
                           preferred_element_type=jnp.float32)


def prepare_fused_table(emb_tables, alpha, kappa, *, dtype=jnp.float32):
    """One-time table prep (hoist out of the per-call path for inference).

    L2-normalize rows (zero rows stay exactly zero), fold alpha/(level+1)**kappa
    into the rows, pad each level to (Vp, Dp) with Vp, Dp multiples of 128, and
    fuse levels into one (L*Vp, Dp) table."""
    L, V, D = emb_tables.shape
    t = emb_tables.astype(jnp.float32)
    norms = jnp.linalg.norm(t, axis=-1, keepdims=True)                  # (L,V,1)
    safe = jnp.where(norms > 0.0, norms, 1.0)
    t = jnp.where(norms > 0.0, t / safe, 0.0)                           # zero rows stay zero
    level_scale = alpha / jnp.arange(1, L + 1, dtype=jnp.float32) ** kappa
    t = t * level_scale[:, None, None]
    Vp = _round_up(V, 128)
    Dp = _round_up(D, 128)
    fused = jnp.pad(t, ((0, 0), (0, Vp - V), (0, Dp - D))).reshape(L * Vp, Dp)
    return fused.astype(dtype)


def static_hierarchical_embedding(ids, values, remap_tables, emb_tables,
                                  alpha, kappa, *, tile_bt=512,
                                  compute_dtype=jnp.float32, fused_table=None):
    """ids: (B,T) int32; values: (B,T) f32; remap_tables: (L, base_vocab) int32
    (the int2int dicts as dense lookup rows); emb_tables: (L, V, D) f32 with row 0
    of every level zeroed (set_zero_weight) and unused rows zero-padded."""
    L, V, D = emb_tables.shape
    B, T = ids.shape
    if ids.shape[1] != values.shape[1]:
        raise ValueError("Codes and values must have the same length")
    BT = B * T

    if fused_table is None:
        fused_table = prepare_fused_table(emb_tables, alpha, kappa, dtype=compute_dtype)
    LVp, Dp = fused_table.shape
    Vp = LVp // L

    # ---- per-token prep (tiny int ops, done once in the wrapper) -------------
    id_tsr = remap_tables[:, ids].astype(jnp.int32)                      # (L,B,T)
    lvl_idx = jnp.arange(L, dtype=jnp.int32)[:, None, None]
    last_nonzero = jnp.max(jnp.where(id_tsr != 0, lvl_idx, 0), axis=0)   # (B,T)

    ids_flat = id_tsr.transpose(1, 2, 0).reshape(BT, L)                  # (BT,L)
    w = jnp.where(lvl_idx == last_nonzero[None],
                  values[None].astype(jnp.float32), 1.0)
    w = w.transpose(1, 2, 0).reshape(BT, L)                              # (BT,L)

    # ---- pad BT to a multiple of the tile (padded rows hit the zero row) -----
    tile = min(tile_bt, _round_up(BT, 8))
    BTp = _round_up(BT, tile)
    ids_flat = jnp.pad(ids_flat, ((0, BTp - BT), (0, 0)))
    w = jnp.pad(w, ((0, BTp - BT), (0, 0)), constant_values=1.0)

    # ---- explicit VMEM budget (table single-buffered + pipelined io) ---------
    bpe = jnp.dtype(compute_dtype).itemsize
    table_bytes = LVp * Dp * bpe                 # 1 buffer (Buffered(1))
    out_bytes = 2 * tile * Dp * 4                # double-buffered output
    in_bytes = 2 * tile * L * (4 + 4)            # double-buffered ids + w
    onehot_bytes = tile * LVp * bpe              # in-kernel one-hot spill
    vmem_limit = int(1.25 * (table_bytes + out_bytes + in_bytes + onehot_bytes)) + (2 << 20)
    vmem_limit = min(max(vmem_limit, 16 << 20), 48 << 20)   # stay under v7x 64 MiB/TC

    out = pl.pallas_call(
        _hier_embed_kernel,
        out_shape=jax.ShapeDtypeStruct((BTp, Dp), jnp.float32),
        grid_spec=pltpu.PrefetchScalarGridSpec(
            num_scalar_prefetch=0,
            grid=(BTp // tile,),
            in_specs=[
                pl.BlockSpec((tile, L), lambda i: (i, 0)),        # raw remapped ids
                pl.BlockSpec((tile, L), lambda i: (i, 0)),        # value weights
                pl.BlockSpec((LVp, Dp), lambda i: (0, 0),         # fused table,
                             pipeline_mode=pl.Buffered(1)),       #  resident, 1 buffer
            ],
            out_specs=pl.BlockSpec((tile, Dp), lambda i: (i, 0)), # lane-dense output
        ),
        compiler_params=pltpu.CompilerParams(
            dimension_semantics=("parallel",),
            vmem_limit_bytes=vmem_limit),
    )(ids_flat, w, fused_table)

    return out[:BT, :D].reshape(B, T, D)


def reference(ids, values, remap_tables, emb_tables, alpha, kappa):
    """Pure-JAX reference mirroring the PyTorch forward."""
    L = emb_tables.shape[0]
    id_tsr = remap_tables[:, ids]                                   # (L,B,T)
    emb = jax.vmap(lambda t, i: t[i])(emb_tables, id_tsr)           # (L,B,T,D)
    norm = jnp.linalg.norm(emb, axis=-1, keepdims=True)
    emb = jnp.where(norm != 0, emb / jnp.where(norm != 0, norm, 1.0), 0.0)
    emb = emb * alpha
    level_mult = 1.0 / jnp.arange(1, L + 1, dtype=jnp.float32) ** kappa
    emb = level_mult[:, None, None, None] * emb
    mask = id_tsr != 0
    lvl = jnp.arange(L)[:, None, None]
    last = jnp.max(jnp.where(mask, lvl, 0), axis=0)                 # (B,T)
    value_tsr = jnp.where(lvl == last[None],
                          values[None].astype(jnp.float32), 1.0)    # (L,B,T)
    emb = emb * value_tsr[..., None]
    return jnp.sum(emb, axis=0)


if __name__ == "__main__":
    key = jax.random.PRNGKey(0)
    L, D, V = 3, 32, 64          # num_levels, hidden_size, padded per-level vocab
    B, T = 2, 8                  # batch, seq length
    base_vocab = 20              # size of the raw id vocabulary
    alpha, kappa = 2.0, 1.5      # cfg.model.embedding.{alpha, kappa}
    level_vocab_sizes = (16, 32, 64)

    k_ids, k_vals, k_remap, k_tab = jax.random.split(key, 4)

    ids = jax.random.randint(k_ids, (B, T), 0, base_vocab, dtype=jnp.int32)
    values = jax.random.uniform(k_vals, (B, T), dtype=jnp.float32,
                                minval=0.5, maxval=2.0)

    # int2int dicts -> dense per-level remap rows (deterministic synthetic).
    rkeys = jax.random.split(k_remap, L)
    remap_rows = []
    for l in range(L):
        row = jax.random.randint(rkeys[l], (base_vocab,), 0,
                                 level_vocab_sizes[l], dtype=jnp.int32)
        row = row.at[0].set(0)   # raw id 0 maps to the zero-embedding row
        remap_rows.append(row)
    remap_tables = jnp.stack(remap_rows)                 # (L, base_vocab)

    # nn.Embedding(V_l, D) with N(0,1) init, row 0 zeroed, padded to common V.
    tkeys = jax.random.split(k_tab, L)
    tables = []
    for l in range(L):
        wl = jax.random.normal(tkeys[l], (level_vocab_sizes[l], D),
                               dtype=jnp.float32)
        wl = wl.at[0].set(0.0)
        wl = jnp.pad(wl, ((0, V - level_vocab_sizes[l]), (0, 0)))
        tables.append(wl)
    emb_tables = jnp.stack(tables)                       # (L, V, D)

    # One-time table precompute (inference path), then the kernel call.
    fused = prepare_fused_table(emb_tables, alpha, kappa)
    out = static_hierarchical_embedding(ids, values, remap_tables, emb_tables,
                                        alpha, kappa, fused_table=fused)
    out = jax.block_until_ready(out)

    ref = reference(ids, values, remap_tables, emb_tables, alpha, kappa)
    assert out.shape == (B, T, D)
    np.testing.assert_allclose(np.asarray(out), np.asarray(ref),
                               rtol=1e-5, atol=1e-5)
    print("KERNEL_OK")
</pallas_src>

<mosaic_0001>
module attributes {stable_mosaic.version = 11 : i64} {
  func.func @_hier_embed_kernel(%arg0: i32, %arg1: memref<16x3xi32, #tpu.memory_space<vmem>>, %arg2: memref<16x3xf32, #tpu.memory_space<vmem>>, %arg3: memref<384x128xf32, #tpu.memory_space<vmem>>, %arg4: memref<16x128xf32, #tpu.memory_space<vmem>>) attributes {dimension_semantics = [#tpu.dimension_semantics<parallel>], iteration_bounds = array<i64: 1>, scalar_prefetch = 0 : i64, scratch_operands = 0 : i64, tpu.core_type = #tpu.core_type<tc>, window_params = [{transform_indices = @transform_0, window_bounds = array<i64: 16, 3>}, {transform_indices = @transform_1, window_bounds = array<i64: 16, 3>}, {pipeline_mode = #tpu.pipeline_mode<synchronous>, transform_indices = @transform_2, window_bounds = array<i64: 384, 128>}, {transform_indices = @transform_3, window_bounds = array<i64: 16, 128>}]} {
    %c0 = arith.constant 0 : index
    %c0_0 = arith.constant 0 : index
    %0 = vector.load %arg1[%c0, %c0_0] : memref<16x3xi32, #tpu.memory_space<vmem>>, vector<16x3xi32>
    %c0_1 = arith.constant 0 : index
    %c0_2 = arith.constant 0 : index
    %1 = vector.load %arg2[%c0_1, %c0_2] : memref<16x3xf32, #tpu.memory_space<vmem>>, vector<16x3xf32>
    %2 = tpu.iota {dimensions = array<i32: 1>} : vector<16x128xi32>
    %3 = vector.extract_strided_slice %0 {offsets = [0, 0], sizes = [16, 1], strides = [1, 1]} : vector<16x3xi32> to vector<16x1xi32>
    %4 = vector.broadcast %3 : vector<16x1xi32> to vector<16x128xi32>
    %5 = arith.cmpi eq, %4, %2 : vector<16x128xi32>
    %6 = vector.extract_strided_slice %1 {offsets = [0, 0], sizes = [16, 1], strides = [1, 1]} : vector<16x3xf32> to vector<16x1xf32>
    %cst = arith.constant 0.000000e+00 : f32
    %7 = vector.shape_cast %6 : vector<16x1xf32> to vector<16x1xf32>
    %8 = vector.broadcast %7 : vector<16x1xf32> to vector<16x128xf32>
    %9 = vector.broadcast %cst : f32 to vector<16x128xf32>
    %10 = arith.select %5, %8, %9 : vector<16x128xi1>, vector<16x128xf32>
    %11 = vector.extract_strided_slice %0 {offsets = [0, 1], sizes = [16, 1], strides = [1, 1]} : vector<16x3xi32> to vector<16x1xi32>
    %12 = vector.broadcast %11 : vector<16x1xi32> to vector<16x128xi32>
    %13 = arith.cmpi eq, %12, %2 : vector<16x128xi32>
    %14 = vector.extract_strided_slice %1 {offsets = [0, 1], sizes = [16, 1], strides = [1, 1]} : vector<16x3xf32> to vector<16x1xf32>
    %cst_3 = arith.constant 0.000000e+00 : f32
    %15 = vector.shape_cast %14 : vector<16x1xf32> to vector<16x1xf32>
    %16 = vector.broadcast %15 : vector<16x1xf32> to vector<16x128xf32>
    %17 = vector.broadcast %cst_3 : f32 to vector<16x128xf32>
    %18 = arith.select %13, %16, %17 : vector<16x128xi1>, vector<16x128xf32>
    %19 = vector.extract_strided_slice %0 {offsets = [0, 2], sizes = [16, 1], strides = [1, 1]} : vector<16x3xi32> to vector<16x1xi32>
    %20 = vector.broadcast %19 : vector<16x1xi32> to vector<16x128xi32>
    %21 = arith.cmpi eq, %20, %2 : vector<16x128xi32>
    %22 = vector.extract_strided_slice %1 {offsets = [0, 2], sizes = [16, 1], strides = [1, 1]} : vector<16x3xf32> to vector<16x1xf32>
    %cst_4 = arith.constant 0.000000e+00 : f32
    %23 = vector.shape_cast %22 : vector<16x1xf32> to vector<16x1xf32>
    %24 = vector.broadcast %23 : vector<16x1xf32> to vector<16x128xf32>
    %25 = vector.broadcast %cst_4 : f32 to vector<16x128xf32>
    %26 = arith.select %21, %24, %25 : vector<16x128xi1>, vector<16x128xf32>
    %27 = tpu.concatenate %10, %18, %26 in 1 : vector<16x128xf32>, vector<16x128xf32>, vector<16x128xf32> -> vector<16x384xf32>
    %c0_5 = arith.constant 0 : index
    %c0_6 = arith.constant 0 : index
    %28 = vector.load %arg3[%c0_5, %c0_6] : memref<384x128xf32, #tpu.memory_space<vmem>>, vector<384x128xf32>
    %cst_7 = arith.constant dense<0.000000e+00> : vector<16x128xf32>
    %29 = tpu.matmul %27, %28, %cst_7 {dimension_numbers = #tpu.dot_dimension_numbers<[1], [0], [0], [1], [0, 0, 1, 1], [], []>} : vector<16x384xf32>, vector<384x128xf32>, vector<16x128xf32> -> vector<16x128xf32>
    %c0_8 = arith.constant 0 : index
    %c0_9 = arith.constant 0 : index
    %30 = vector.load %arg4[%c0_8, %c0_9] : memref<16x128xf32, #tpu.memory_space<vmem>>, vector<16x128xf32>
    tpu.vector_store %arg4[%c0_8, %c0_9], %29 {strides = array<i32>} : memref<16x128xf32, #tpu.memory_space<vmem>>, vector<16x128xf32>,
    return
  }
  func.func @transform_0(%arg0: i32) -> (i32, i32) {
    %c0_i32 = arith.constant 0 : i32
    %c0_i32_0 = arith.constant 0 : i32
    return %arg0, %c0_i32 : i32, i32
  }
  func.func @transform_1(%arg0: i32) -> (i32, i32) {
    %c0_i32 = arith.constant 0 : i32
    %c0_i32_0 = arith.constant 0 : i32
    return %arg0, %c0_i32 : i32, i32
  }
  func.func @transform_2(%arg0: i32) -> (i32, i32) {
    %c0_i32 = arith.constant 0 : i32
    %c0_i32_0 = arith.constant 0 : i32
    %c0_i32_1 = arith.constant 0 : i32
    return %c0_i32, %c0_i32_0 : i32, i32
  }
  func.func @transform_3(%arg0: i32) -> (i32, i32) {
    %c0_i32 = arith.constant 0 : i32
    %c0_i32_0 = arith.constant 0 : i32
    return %arg0, %c0_i32 : i32, i32
  }
}

</mosaic_0001>

<bundles_post_ra>
// kernel: tpu_custom_call.1
= control target key start
LH: loop header
LB: loop body
LE: loop exit
PB: predicated region body
PF: predicated region fallthrough
CT: control target
= control target key end

     0   :  { %8 = vsyncpa [#allocation3], 0  ;;  %s519_s0 = inlined_call_operand.vmem [shape: s32[16,3], index: 0, kind: input, shape index: {}]   ;;  %s520_s1 = inlined_call_operand.vmem [shape: f32[16,3], index: 1, kind: input, shape index: {}]   ;;  %s521_s2 = inlined_call_operand.hbm [shape: f32[384,128], index: 2, kind: input, shape index: {}]   ;;  %s522_s3 = inlined_call_operand.hbm [shape: f32[16,128], index: 3, kind: output, shape index: {}]  }
   0x1   :  { %9 = vsyncpa [#allocation4], 0  ;;  %s463_s12 = smov [#allocation2]  }
   0x2   :  { %s19_s13 = sshll.u32 %s463_s12, 4  ;;  %s20_s13 = int_to_ptr.vmem [resolvable:$true] %s19_s13 }
   0x3   :  { %s427_s14 = scalar_lea.vmem %s20_s13, 6144  ;;  %p432_p1 = scmp.lt.s32.totalorder %s20_s13, %s20_s13 }
   0x4   :  { %p428_p0 = scmp.ne.s32.totalorder %s20_s13, %s427_s14  ;;  %p433_p2 = scmp.lt.s32.totalorder %s427_s14, %s427_s14 }
   0x6   :  { %p434_p3 = por %p433_p2, %p432_p1 }
   0x8   :  { %p435_p4 = pnand %p434_p3, %p428_p0 }
   0xa   :  { %438 = shalt.err (!%p435_p4)
}
   0xb   :  { %s464_s15 = smov 128   ;;  %s465_s16 = smov 8  }
   0xc   :  { %25 = dma.hbm_to_vmem [thread:$0]  %s521_s2, 6144, %s20_s13, [#allocation3], %s464_s15, %s464_s15, %s465_s16  }
   0xd   :  { %459 = dma.done.wait [#allocation3], 6144  }
   0xe   :  { %460 = vsyncadd [#allocation3], 4294961152  ;;  %v466_v0 = vmov 1   ;;  %v499_v1 = vld [vmem:[%s520_s1] sm:$0xff]  ;;  %v122_v3 = vld [vmem:[#allocation2 + $0xf8] sm:$0xff]  ;;  %v467_v7 = vmov 0   ;;  %v33_v55 = vlaneseq }
   0xf   :  { %414 = vset.pattern.permute.xlu1 %v466_v0  ;;  %412 = vset.pattern.permute.xlu0 %v466_v0  ;;  %v29_v2 = vld [vmem:[%s519_s0] sm:$0xff]  ;;  %v106_v4 = vld [vmem:[#allocation2 + $0x78] sm:$0xff]  ;;  %v121_v5 = vld [vmem:[#allocation2 + $0xf0] sm:$0xff]  ;;  %v468_v24 = vmov 2  }
  0x10   :  { %64 = vperm.xlu1 %414, %v499_v1   ;;  %56 = vperm.xlu0 %412, %v29_v2   ;;  %v105_v6 = vld [vmem:[#allocation2 + $0x70] sm:$0xff]  ;;  %v120_v8 = vld [vmem:[#allocation2 + $0xe8] sm:$0xff]  ;;  %v119_v11 = vld [vmem:[#allocation2 + $0xe0] sm:$0xff]  ;;  %v34_v56 = vand.u32 127, %v33_v55 }
  0x11   :  { %314 = vmatprep.subr.mxu0 %v122_v3  ;;  %v104_v9 = vld [vmem:[#allocation2 + $0x68] sm:$0xff]  ;;  %v138_v12 = vld [vmem:[#allocation2 + $0x178] sm:$0xff]  ;;  %v103_v13 = vld [vmem:[#allocation2 + $0x60] sm:$0xff] }
  0x12   :  { %315 = vmatpush3.msra.mxu0 %v106_v4  ;;  %v30_v10 = vld [vmem:[%s519_s0 + $0x8] sm:$0xff]  ;;  %370 = vmatprep.subr.mxu1 %v138_v12  ;;  %v118_v14 = vld [vmem:[#allocation2 + $0xd8] sm:$0xff]  ;;  %v137_v15 = vld [vmem:[#allocation2 + $0x170] sm:$0xff]  ;;  %s469_s0 = smov [#allocation5]  }
  0x13   :  { %316 = vmatprep.subr.mxu0 %v121_v5  ;;  %v32_v16 = vld [vmem:[%s520_s1 + $0x8] sm:$0xff]  ;;  %v102_v17 = vld [vmem:[#allocation2 + $0x58] sm:$0xff]  ;;  %v117_v18 = vld [vmem:[#allocation2 + $0xd0] sm:$0xff]  ;;  %371 = vmatpush3.msra.mxu1 %v138_v12  ;;  %s296_s1 = sshll.u32 %s469_s0, 4  ;;  %s297_s1 = int_to_ptr.vmem [resolvable:$true] %s296_s1 }
  0x14   :  { %415 = vset.pattern.permute.xlu1 %v467_v7  ;;  %413 = vset.pattern.permute.xlu0 %v467_v7  ;;  %v101_v19 = vld [vmem:[#allocation2 + $0x50] sm:$0xff]  ;;  %v116_v20 = vld [vmem:[#allocation2 + $0xc8] sm:$0xff]  ;;  %v115_v23 = vld [vmem:[#allocation2 + $0xc0] sm:$0xff]  ;;  %s439_s26 = scalar_lea.vmem %s297_s1, 256  ;;  %p444_p6 = scmp.lt.s32.totalorder %s297_s1, %s297_s1 }
  0x15   :  { %45 = vperm.xlu1 %415, %v499_v1   ;;  %36 = vperm.xlu0 %413, %v29_v2   ;;  %v136_v21 = vld [vmem:[#allocation2 + $0x168] sm:$0xff]  ;;  %v99_v25 = vld [vmem:[#allocation2 + $0x40] sm:$0xff]  ;;  %v114_v26 = vld [vmem:[#allocation2 + $0xb8] sm:$0xff]  ;;  %p440_p5 = scmp.ne.s32.totalorder %s297_s1, %s439_s26  ;;  %p445_p7 = scmp.lt.s32.totalorder %s439_s26, %s439_s26 }
  0x16   :  { %317 = vmatpush3.msra.mxu0 %v105_v6  ;;  %372 = vmatprep.subr.mxu1 %v137_v15  ;;  %v100_v22 = vld [vmem:[#allocation2 + $0x48] sm:$0xff]  ;;  %v135_v27 = vld [vmem:[#allocation2 + $0x160] sm:$0xff]  ;;  %v98_v28 = vld [vmem:[#allocation2 + $0x38] sm:$0xff] }
  0x17   :  { %318 = vmatprep.subr.mxu0 %v120_v8  ;;  %373 = vmatpush3.msra.mxu1 %v137_v15  ;;  %v113_v29 = vld [vmem:[#allocation2 + $0xb0] sm:$0xff]  ;;  %v134_v31 = vld [vmem:[#allocation2 + $0x158] sm:$0xff]  ;;  %v112_v32 = vld [vmem:[#allocation2 + $0xa8] sm:$0xff]  ;;  %p446_p8 = por %p445_p7, %p444_p6 }
  0x18   :  { %319 = vmatpush3.msra.mxu0 %v104_v9  ;;  %374 = vmatprep.subr.mxu1 %v136_v21  ;;  %v97_v30 = vld [vmem:[#allocation2 + $0x30] sm:$0xff]  ;;  %v96_v33 = vld [vmem:[#allocation2 + $0x28] sm:$0xff]  ;;  %v111_v35 = vld [vmem:[#allocation2 + $0xa0] sm:$0xff] }
  0x19   :  { %416 = vset.pattern.permute.xlu1 %v466_v0  ;;  %39 = vperm.xlu0 %413, %v30_v10   ;;  %v133_v34 = vld [vmem:[#allocation2 + $0x150] sm:$0xff]  ;;  %v95_v36 = vld [vmem:[#allocation2 + $0x20] sm:$0xff]  ;;  %v110_v37 = vld [vmem:[#allocation2 + $0x98] sm:$0xff]  ;;  %p447_p9 = pnand %p446_p8, %p440_p5 }
  0x1a   :  { %59 = vperm.xlu1 %416, %v30_v10   ;;  %320 = vmatprep.subr.mxu0 %v119_v11  ;;  %v132_v38 = vld [vmem:[#allocation2 + $0x148] sm:$0xff]  ;;  %v94_v39 = vld [vmem:[#allocation2 + $0x18] sm:$0xff]  ;;  %v109_v40 = vld [vmem:[#allocation2 + $0x90] sm:$0xff] }
  0x1b   :  { %321 = vmatpush3.msra.mxu0 %v103_v13  ;;  %375 = vmatpush3.msra.mxu1 %v136_v21  ;;  %v131_v41 = vld [vmem:[#allocation2 + $0x140] sm:$0xff]  ;;  %v93_v42 = vld [vmem:[#allocation2 + $0x10] sm:$0xff]  ;;  %v108_v43 = vld [vmem:[#allocation2 + $0x88] sm:$0xff] }
  0x1c   :  { %322 = vmatprep.subr.mxu0 %v118_v14  ;;  %376 = vmatprep.subr.mxu1 %v135_v27  ;;  %v130_v44 = vld [vmem:[#allocation2 + $0x138] sm:$0xff]  ;;  %v92_v45 = vld [vmem:[#allocation2 + $0x8] sm:$0xff]  ;;  %v107_v46 = vld [vmem:[#allocation2 + $0x80] sm:$0xff] }
  0x1d   :  { %50 = vperm.xlu0 %413, %v32_v16   ;;  %323 = vmatpush3.msra.mxu0 %v102_v17  ;;  %v129_v47 = vld [vmem:[#allocation2 + $0x130] sm:$0xff]  ;;  %v91_v48 = vld [vmem:[#allocation2] sm:$0xff]  ;;  %v128_v49 = vld [vmem:[#allocation2 + $0x128] sm:$0xff] }
  0x1e   :  { %68 = vperm.xlu1 %416, %v32_v16   ;;  %324 = vmatprep.subr.mxu0 %v117_v18  ;;  %v127_v50 = vld [vmem:[#allocation2 + $0x120] sm:$0xff]  ;;  %v126_v51 = vld [vmem:[#allocation2 + $0x118] sm:$0xff]  ;;  %v125_v52 = vld [vmem:[#allocation2 + $0x110] sm:$0xff] }
  0x1f   :  { %325 = vmatpush3.msra.mxu0 %v101_v19  ;;  %377 = vmatpush3.msra.mxu1 %v135_v27  ;;  %v124_v53 = vld [vmem:[#allocation2 + $0x108] sm:$0xff]  ;;  %v123_v54 = vld [vmem:[#allocation2 + $0x100] sm:$0xff] }
  0x20   :  { %326 = vmatprep.subr.mxu0 %v116_v20  ;;  %378 = vmatprep.subr.mxu1 %v134_v31 }
  0x21   :  { %418 = vset.pattern.permute.xlu0 %v468_v24  ;;  %327 = vmatpush3.msra.mxu0 %v100_v22 }
  0x22   :  { %417 = vset.pattern.permute.xlu1 %v468_v24  ;;  %77 = vperm.xlu0 %418, %v30_v10  }
  0x23   :  { %74 = vperm.xlu1 %417, %v29_v2   ;;  %328 = vmatprep.subr.mxu0 %v115_v23 }
  0x24   :  { %329 = vmatpush3.msra.mxu0 %v99_v25  ;;  %379 = vmatpush3.msra.mxu1 %v134_v31 }
  0x25   :  { %330 = vmatprep.subr.mxu0 %v114_v26  ;;  %380 = vmatprep.subr.mxu1 %v133_v34 }
  0x26   :  { %331 = vmatpush3.msra.mxu0 %v98_v28  ;;  %381 = vmatpush3.msra.mxu1 %v133_v34 }
  0x27   :  { %82 = vperm.xlu1 %417, %v499_v1   ;;  %332 = vmatprep.subr.mxu0 %v113_v29 }
  0x28   :  { %333 = vmatpush3.msra.mxu0 %v97_v30  ;;  %382 = vmatprep.subr.mxu1 %v132_v38 }
  0x29   :  { %334 = vmatprep.subr.mxu0 %v112_v32  ;;  %383 = vmatpush3.msra.mxu1 %v132_v38 }
  0x2a   :  { %335 = vmatpush3.msra.mxu0 %v96_v33  ;;  %384 = vmatprep.subr.mxu1 %v131_v41 }
  0x2b   :  { %86 = vperm.xlu1 %417, %v32_v16   ;;  %336 = vmatprep.subr.mxu0 %v111_v35 }
  0x2c   :  { %337 = vmatpush3.msra.mxu0 %v95_v36  ;;  %385 = vmatpush3.msra.mxu1 %v131_v41 }
  0x2d   :  { %338 = vmatprep.subr.mxu0 %v110_v37  ;;  %386 = vmatprep.subr.mxu1 %v130_v44 }
  0x2e   :  { %339 = vmatpush3.msra.mxu0 %v94_v39  ;;  %387 = vmatpush3.msra.mxu1 %v130_v44 }
  0x2f   :  { %340 = vmatprep.subr.mxu0 %v109_v40  ;;  %388 = vmatprep.subr.mxu1 %v129_v47 }
  0x30   :  { %341 = vmatpush3.msra.mxu0 %v93_v42  ;;  %389 = vmatpush3.msra.mxu1 %v129_v47 }
  0x31   :  { %342 = vmatprep.subr.mxu0 %v108_v43  ;;  %390 = vmatprep.subr.mxu1 %v128_v49 }
  0x32   :  { %343 = vmatpush3.msra.mxu0 %v92_v45  ;;  %391 = vmatpush3.msra.mxu1 %v128_v49 }
  0x33   :  { %344 = vmatprep.subr.mxu0 %v107_v46  ;;  %392 = vmatprep.subr.mxu1 %v127_v50 }
  0x34   :  { %345 = vmatpush3.msra.mxu0 %v91_v48  ;;  %393 = vmatpush3.msra.mxu1 %v127_v50 }
  0x35   :  { %394 = vmatprep.subr.mxu1 %v126_v51 }
  0x36   :  { %395 = vmatpush3.msra.mxu1 %v126_v51 }
  0x37   :  { %396 = vmatprep.subr.mxu1 %v125_v52 }
  0x38   :  { %397 = vmatpush3.msra.mxu1 %v125_v52 }
  0x39   :  { %398 = vmatprep.subr.mxu1 %v124_v53 }
  0x3a   :  { %399 = vmatpush3.msra.mxu1 %v124_v53 }
  0x3b   :  { %400 = vmatprep.subr.mxu1 %v123_v54 }
  0x3c   :  { %401 = vmatpush3.msra.mxu1 %v123_v54 }
  0x8b   :  { %v65_v57 = vpop.permute.xlu1 %64  ;;  %v57_v58 = vpop.permute.xlu0 %56 }
  0x8c   :  { %vm61_vm0 = vcmp.eq.s32.totalorder %v57_v58, %v34_v56 }
  0x8d   :  { %308 = vmatprep.mubr.msk.f32.mxu0 %vm61_vm0, %v65_v57 }
  0x90   :  { %v46_v59 = vpop.permute.xlu1 %45  ;;  %v37_v60 = vpop.permute.xlu0 %36 }
  0x91   :  { %vm41_vm1 = vcmp.eq.s32.totalorder %v37_v60, %v34_v56 }
  0x92   :  { %309 = vmatmul.mubr.msk.f32.vlgmr.msra.gmra.mxu0 %vm41_vm1, %v46_v59 }
  0x94   :  { %v40_v61 = vpop.permute.xlu0 %39 }
  0x95   :  { %v60_v62 = vpop.permute.xlu1 %59  ;;  %vm42_vm2 = vcmp.eq.s32.totalorder %v40_v61, %v34_v56 }
  0x96   :  { %vm62_vm3 = vcmp.eq.s32.totalorder %v60_v62, %v34_v56 }
  0x98   :  { %v51_v0 = vpop.permute.xlu0 %50 }
  0x99   :  { %v69_v63 = vpop.permute.xlu1 %68 }
  0x9a   :  { %310 = vmatprep.mubr.msk.f32.mxu0 %vm62_vm3, %v69_v63 }
  0x9b   :  { %311 = vmatmul.mubr.msk.f32.gmra.mxu0 %vm42_vm2, %v51_v0 }
  0x9d   :  { %v78_v2 = vpop.permute.xlu0 %77 }
  0x9e   :  { %v75_v1 = vpop.permute.xlu1 %74  ;;  %vm80_vm5 = vcmp.eq.s32.totalorder %v78_v2, %v34_v56 }
  0x9f   :  { %vm79_vm4 = vcmp.eq.s32.totalorder %v75_v1, %v34_v56 }
  0xa2   :  { %v83_v3 = vpop.permute.xlu1 %82 }
  0xa3   :  { %402 = vmatprep.mubr.msk.f32.mxu1 %vm79_vm4, %v83_v3 }
  0xa6   :  { %v87_v4 = vpop.permute.xlu1 %86 }
  0xa7   :  { %403 = vmatmul.mubr.msk.f32.vlgmr.msra.gmra.mxu1 %vm80_vm5, %v87_v4 }
 0x152   :  { %v346_v5 = vpop.f32.mrf.mxu0 }
 0x154   :  { %v347_v6 = vpop.f32.mrf.mxu0 }
 0x155   :  { %v348_v11 = vadd.f32 %v347_v6, %v346_v5 }
 0x15b   :  { %v349_v7 = vpop.f32.mrf.mxu0 }
 0x15d   :  { %v350_v8 = vpop.f32.mrf.mxu0 }
 0x15e   :  { %v351_v9 = vadd.f32 %v350_v8, %v349_v7 }
 0x167   :  { %v404_v10 = vpop.f32.mrf.mxu1 }
 0x168   :  { %v286_v12 = vadd.f32 %v404_v10, %v351_v9 }
 0x169   :  { %v280_v13 = vpop.f32.mrf.mxu1 }
 0x16a   :  { %290 = vst [vmem:[#allocation5 + $0x8] sm:$0xff] %v286_v12  ;;  %v281_v14 = vadd.f32 %v348_v11, %v280_v13 }
 0x16c   :  { %289 = vst [vmem:[#allocation5] sm:$0xff] %v281_v14 }
 0x16d   :  { %450 = shalt.err (!%p447_p9)
}
 0x16e   :  { %302 = dma.vmem_to_hbm [thread:$0]  %s297_s1, 256, %s522_s3, [#allocation4], %s464_s15, %s464_s15, %s465_s16  }
 0x16f   :  { %461 = dma.done.wait [#allocation4], 256  }
 0x170   :  { %462 = vsyncadd [#allocation4], 4294967040 }
 0x171   :  { %306 = vsyncpa [#allocation3], 1 }
 0x172   :  { %307 = vsyncpa [#allocation4], 1 }

</bundles_post_ra>
